<compile_context>
chip_gen: v7x
topology: tpu7x:2x2x1
jax: 0.10.0
libtpu: 0.0.40
codegen_flags: <defaults>
</compile_context>

<pallas_src>
import functools

import jax
import jax.numpy as jnp
from jax.experimental import pallas as pl
from jax.experimental.pallas import tpu as pltpu

EPS = 1e-6

_TILE_N_MAX = 512                      # max rows (B*C) per block
_TILE_HW_MAX = 4096                    # max reduction columns per block
_VMEM_LIMIT_BYTES = 48 * 1024 * 1024   # fits v5e/v6e (128 MiB) and v7x (64 MiB)


def _round_up(a, b):
    return ((a + b - 1) // b) * b


def _sublane_multiple(dtype):
    # f32 -> 8 sublanes per vreg; bf16/f16 pack along sublanes -> 16.
    return 8 if jnp.dtype(dtype).itemsize >= 4 else 16


def _choose_tiles(n, hw, dtype):
    """Pick (tile_n, tile_hw, n_pad, hw_pad), minimizing (usually avoiding) padding.

    A block dim equal to the full array dim is exempt from the (8,128)
    divisibility rule, so small/ragged N and HW need no padding at all.
    """
    sub = _sublane_multiple(dtype)

    # HW (reduction / lane) axis.
    if hw <= _TILE_HW_MAX:
        tile_hw, hw_pad = hw, hw                      # full-dim: no pad, no mask
    else:
        nb = pl.cdiv(hw, _TILE_HW_MAX)
        tile_hw = _round_up(pl.cdiv(hw, nb), 128)     # spread blocks -> minimal pad
        hw_pad = tile_hw * nb

    # N (parallel / sublane) axis.
    if n <= _TILE_N_MAX:
        if n >= 2 * sub and n % (2 * sub) == 0:
            tile_n = n // 2                           # >= 2 blocks for v7x's 2 TCs
        else:
            tile_n = n                                # full-dim: no pad
        n_pad = n
    else:
        nb = pl.cdiv(n, _TILE_N_MAX)
        tile_n = _round_up(pl.cdiv(n, nb), sub)
        n_pad = tile_n * nb

    return tile_n, tile_hw, n_pad, hw_pad


def _gem_kernel(p_ref, x_ref, o_ref, acc_ref, *,
                hw_true, hw_pad, tile_hw, num_hw_blocks, eps):
    # p_ref  : SMEM (scalar prefetch), shape (1,) -- learnable GeM exponent
    # x_ref  : VMEM, (TILE_N, TILE_HW) block of the (N, HW) input
    # o_ref  : VMEM, (TILE_N, 1) output column
    # acc_ref: VMEM scratch, (TILE_N, 128) lane-dense f32 accumulator
    p = p_ref[0]
    x = jnp.maximum(x_ref[...].astype(jnp.float32), eps)   # clamp(min=eps)
    # p is a traced (learnable) scalar -> x**p lowers to exp(p*log(x)) on EUP.
    xp = jnp.power(x, p)

    if num_hw_blocks == 1:
        # Whole reduction fits in one block: no accumulator, no pad, no mask.
        mean = jnp.sum(xp, axis=-1, keepdims=True) * (1.0 / hw_true)
        o_ref[...] = jnp.power(mean, 1.0 / p).astype(o_ref.dtype)
        return

    k = pl.program_id(1)

    @pl.when(k == 0)
    def _():
        acc_ref[...] = jnp.zeros_like(acc_ref)

    # Lane-dense accumulation: pure VPU adds over static, lane-aligned
    # 128-wide slices.  The single cross-lane XLU reduce happens once, in the
    # finalize branch, instead of every hot-loop step.
    num_groups = tile_hw // 128          # tile_hw is a multiple of 128 here
    partial = xp[:, 0:128]
    for g in range(1, num_groups):
        partial = partial + xp[:, g * 128:(g + 1) * 128]
    acc_ref[...] += partial

    @pl.when(k == num_hw_blocks - 1)
    def _():
        total = jnp.sum(acc_ref[...], axis=-1, keepdims=True)
        if hw_pad != hw_true:
            # Padded (zero) columns were clamped to eps and each contributed
            # eps**p -- remove them analytically instead of masking hot steps.
            total = total - (hw_pad - hw_true) * jnp.power(jnp.float32(eps), p)
        mean = total * (1.0 / hw_true)                      # true H*W, not padded
        o_ref[...] = jnp.power(mean, 1.0 / p).astype(o_ref.dtype)


def gem_pallas(x, p, eps=EPS):
    """x: (B, C, H, W) f32/bf16, p: scalar / shape-(1,) float. Returns (B, C, 1, 1)."""
    B, C, H, W = x.shape
    N, HW = B * C, H * W
    x2d = x.reshape(N, HW)

    tile_n, tile_hw, n_pad, hw_pad = _choose_tiles(N, HW, x.dtype)
    if (n_pad, hw_pad) != (N, HW):
        # Only large + ragged shapes reach here; common GeM shapes pad nothing.
        x2d = jnp.pad(x2d, ((0, n_pad - N), (0, hw_pad - HW)))

    grid = (n_pad // tile_n, hw_pad // tile_hw)
    p_arr = jnp.asarray(p, jnp.float32).reshape(1)

    kernel = functools.partial(
        _gem_kernel, hw_true=HW, hw_pad=hw_pad, tile_hw=tile_hw,
        num_hw_blocks=grid[1], eps=eps)

    itemsize = jnp.dtype(x.dtype).itemsize
    out2d = pl.pallas_call(
        kernel,
        out_shape=jax.ShapeDtypeStruct((n_pad, 1), x.dtype),
        grid_spec=pltpu.PrefetchScalarGridSpec(
            num_scalar_prefetch=1,                          # p -> SMEM before grid
            grid=grid,
            in_specs=[
                pl.BlockSpec((tile_n, tile_hw), lambda i, k, p_ref: (i, k)),
            ],
            out_specs=pl.BlockSpec((tile_n, 1), lambda i, k, p_ref: (i, 0)),
            scratch_shapes=[pltpu.VMEM((tile_n, 128), jnp.float32)],
        ),
        compiler_params=pltpu.CompilerParams(
            dimension_semantics=("parallel", "arbitrary"),  # N sharded on v7x TCs
            vmem_limit_bytes=_VMEM_LIMIT_BYTES,
        ),
        cost_estimate=pl.CostEstimate(
            flops=3 * n_pad * hw_pad,
            transcendentals=2 * n_pad * hw_pad,             # log + exp per element
            bytes_accessed=itemsize * (n_pad * hw_pad + n_pad),
        ),
    )(p_arr, x2d)

    return out2d[:N].reshape(B, C, 1, 1)


def gem_reference(x, p, eps=EPS):
    """Pure-JAX reference mirroring the PyTorch gem()."""
    p = jnp.asarray(p, jnp.float32).reshape(1)
    xp = jnp.power(jnp.clip(x.astype(jnp.float32), eps), p)
    mean = jnp.mean(xp, axis=(-2, -1), keepdims=True)
    return jnp.power(mean, 1.0 / p).astype(x.dtype)


if __name__ == "__main__":
    key = jax.random.PRNGKey(0)

    # Deterministic parameter init, matching GeM.__init__ (p = 3.0).
    p = jnp.ones((1,), jnp.float32) * 3.0

    shapes = [
        (2, 4, 16, 16),   # base case from the module spec (single HW block)
        (2, 8, 7, 7),     # classic GeM 7x7 map -> HW=49; full-dim, no pad/mask
        (3, 5, 9, 11),    # ragged N and HW -> full-dim exemption, still no pad
        (1, 2, 68, 68),   # HW=4624 > tile max -> multi-block accumulator path
    ]
    for idx, (B, C, H, W) in enumerate(shapes):
        k = jax.random.fold_in(key, idx)
        x = jax.random.uniform(k, (B, C, H, W), dtype=jnp.float32)

        out = jax.block_until_ready(gem_pallas(x, p))
        ref = gem_reference(x, p)

        assert out.shape == (B, C, 1, 1), out.shape
        assert jnp.allclose(out, ref, rtol=1e-5, atol=1e-5), (
            f"shape {(B, C, H, W)}: max abs err {jnp.max(jnp.abs(out - ref))}"
        )

    print("KERNEL_OK")
</pallas_src>

<mosaic_0001>
module attributes {stable_mosaic.version = 11 : i64} {
  func.func @_gem_kernel(%arg0: i32, %arg1: i32, %arg2: memref<1xf32, #tpu.memory_space<smem>>, %arg3: memref<8x256xf32, #tpu.memory_space<vmem>>, %arg4: memref<8x1xf32, #tpu.memory_space<vmem>>, %arg5: memref<8x128xf32, #tpu.memory_space<vmem>>) attributes {dimension_semantics = [#tpu.dimension_semantics<parallel>, #tpu.dimension_semantics<arbitrary>], iteration_bounds = array<i64: 1, 1>, scalar_prefetch = 1 : i64, scratch_operands = 1 : i64, tpu.core_type = #tpu.core_type<tc>, window_params = [{transform_indices = @transform_0, window_bounds = array<i64: 8, 256>}, {transform_indices = @transform_1, window_bounds = array<i64: 8, 1>}]} {
    %c0 = arith.constant 0 : index
    %0 = memref.load %arg2[%c0] : memref<1xf32, #tpu.memory_space<smem>>
    %c0_0 = arith.constant 0 : index
    %c0_1 = arith.constant 0 : index
    %1 = vector.load %arg3[%c0_0, %c0_1] : memref<8x256xf32, #tpu.memory_space<vmem>>, vector<8x256xf32>
    %cst = arith.constant 9.99999997E-7 : f32
    %2 = vector.broadcast %cst : f32 to vector<8x256xf32>
    %3 = arith.maximumf %1, %2 : vector<8x256xf32>
    %4 = vector.broadcast %0 : f32 to vector<8x256xf32>
    %5 = math.powf %3, %4 : vector<8x256xf32>
    %cst_2 = arith.constant dense<0.000000e+00> : vector<8xf32>
    %6 = vector.multi_reduction <add>, %5, %cst_2 [1] : vector<8x256xf32> to vector<8xf32>
    %7 = vector.shape_cast %6 : vector<8xf32> to vector<8x1xf32>
    %cst_3 = arith.constant 3.906250e-03 : f32
    %8 = vector.broadcast %cst_3 : f32 to vector<8x1xf32>
    %9 = arith.mulf %7, %8 : vector<8x1xf32>
    %cst_4 = arith.constant 1.000000e+00 : f32
    %10 = arith.divf %cst_4, %0 : f32
    %11 = vector.broadcast %10 : f32 to vector<8x1xf32>
    %12 = math.powf %9, %11 : vector<8x1xf32>
    %c0_5 = arith.constant 0 : index
    %c0_6 = arith.constant 0 : index
    %13 = vector.load %arg4[%c0_5, %c0_6] : memref<8x1xf32, #tpu.memory_space<vmem>>, vector<8x1xf32>
    tpu.vector_store %arg4[%c0_5, %c0_6], %12 {strides = array<i32>} : memref<8x1xf32, #tpu.memory_space<vmem>>, vector<8x1xf32>,
    return
  }
  func.func @transform_0(%arg0: i32, %arg1: i32, %arg2: memref<1xf32, #tpu.memory_space<smem>>) -> (i32, i32) {
    %c0_i32 = arith.constant 0 : i32
    return %arg0, %arg1 : i32, i32
  }
  func.func @transform_1(%arg0: i32, %arg1: i32, %arg2: memref<1xf32, #tpu.memory_space<smem>>) -> (i32, i32) {
    %c0_i32 = arith.constant 0 : i32
    %c0_i32_0 = arith.constant 0 : i32
    return %arg0, %c0_i32 : i32, i32
  }
}

</mosaic_0001>

<bundles_post_ra>
// kernel: tpu_custom_call.1
= control target key start
LH: loop header
LB: loop body
LE: loop exit
PB: predicated region body
PF: predicated region fallthrough
CT: control target
= control target key end

     0   :  { %8 = vsyncpa [#allocation6], 0  ;;  %s245_s9 = smov [#allocation5]   ;;  %s473_s0 = inlined_call_operand.<no memory space> [shape: f32[1], index: 0, kind: input, shape index: {}]   ;;  %s474_s1 = inlined_call_operand.hbm [shape: f32[8,256], index: 1, kind: input, shape index: {}]   ;;  %s475_s2 = inlined_call_operand.vmem [shape: f32[8,1], index: 2, kind: output, shape index: {}]  }
   0x1   :  { %s15_s10 = sshll.u32 %s245_s9, 4  ;;  %s221_s13 = scalar_lea.hbm %s474_s1, 256  ;;  %s16_s10 = int_to_ptr.vmem [resolvable:$true] %s15_s10 }
   0x2   :  { %p222_p0 = scmp.ne.s32.totalorder %s474_s1, %s221_s13  ;;  %p225_p1 = scmp.lt.u32.totalorder %s221_s13, %s474_s1 }
   0x4   :  { %p227_p2 = pnand %p225_p1, %p222_p0 }
   0x6   :  { %230 = shalt.err (!%p227_p2)
}
   0x7   :  { %s231_s18 = scalar_lea.vmem %s16_s10, 256  ;;  %p236_p4 = scmp.lt.s32.totalorder %s16_s10, %s16_s10 }
   0x8   :  { %p232_p3 = scmp.ne.s32.totalorder %s16_s10, %s231_s18  ;;  %p237_p5 = scmp.lt.s32.totalorder %s231_s18, %s231_s18 }
   0xa   :  { %p238_p6 = por %p237_p5, %p236_p4 }
   0xc   :  { %p239_p7 = pnand %p238_p6, %p232_p3 }
   0xe   :  { %242 = shalt.err (!%p239_p7)
}
   0xf   :  { %18 = dma.hbm_to_vmem [thread:$0]  %s474_s1, 256, %s16_s10, [#allocation6]  }
  0x10   :  { %243 = dma.done.wait [#allocation6], 256  }
  0x11   :  { %244 = vsyncadd [#allocation6], 4294967040  ;;  %v278_v0 = vstv %s473_s0  ;;  %v23_v2 = vld [vmem:[#allocation5] sm:$0xff]  ;;  %v24_v3 = vld [vmem:[#allocation5 + $0x8] sm:$0xff]  ;;  %v246_v21 = vmov 2139095040   ;;  %v247_v27 = vmov 0  }
  0x12   :  { %v281_v1 = vand.u32 2147483647, %v278_v0  ;;  %207 = vrcp.f32 %v278_v0  ;;  %v284_v4 = vmax.f32 %v23_v2, 1e-06  ;;  %v286_v5 = vmax.f32 %v24_v3, 1e-06 }
  0x13   :  { %v55_v8 = vtrunc.f32 %v278_v0  ;;  %vm54_vm7 = vcmp.lt.f32.partialorder %v278_v0, 0 }
  0x14   :  { %v59_v6 = vtrunc.f32 %v281_v1  ;;  %v290_v7 = vand.u32 2147483647, %v284_v4  ;;  %v294_v9 = vand.u32 2147483647, %v286_v5  ;;  %vm476_vm0 = vcmp.eq.f32.partialorder %v281_v1, 2139095040 }
  0x15   :  { %vm56_vm1 = vcmp.ne.f32.partialorder %v278_v0, %v55_v8  ;;  %vm58_vm5 = vcmp.lt.f32.partialorder %v281_v1, 1266679808  ;;  %vm67_vm8 = vcmp.eq.f32.partialorder %v284_v4, 0  ;;  %vm119_vm11 = vcmp.eq.f32.partialorder %v286_v5, 0 }
  0x16   :  { %209 = vlog2.f32 %v290_v7  ;;  %v60_v10 = vcvt.f32.s32 %v59_v6  ;;  %vm302_vm2 = vmor %vm56_vm1, %vm476_vm0  ;;  %vm70_vm9 = vcmp.gt.f32.partialorder %v290_v7, 1065353216  ;;  %vm122_vm13 = vcmp.gt.f32.partialorder %v294_v9, 1065353216 }
  0x17   :  { %211 = vlog2.f32 %v294_v9  ;;  %vm63_vm4 = vmneg %vm302_vm2  ;;  %vm477_vm14 = vcmp.lt.f32.partialorder %v284_v4, 0  ;;  %v86_v22 = vsel %vm54_vm7, 0, %v246_v21  ;;  %vm69_vm0 = vcmp.lt.s32.totalorder %v284_v4, 0 }
  0x18   :  { %v61_v12 = vand.u32 1, %v60_v10  ;;  %vm323_vm12 = vmand %vm54_vm7, %vm67_vm8  ;;  %v87_v26 = vxor.u32 2147483648, %v86_v22  ;;  %v74_v28 = vsel %vm54_vm7, 2139095040, %v247_v27 }
  0x19   :  { %vm331_vm15 = vmxor %vm54_vm7, %vm70_vm9 }
  0x1a   :  { %vm62_vm3 = vcmp.eq.s32.totalorder %v61_v12, 1  ;;  %vm342_vm1 = vmand %vm54_vm7, %vm119_vm11 }
  0x1b   :  { %vm64_vm6 = vmand %vm62_vm3, %vm63_vm4 }
  0x1c   :  { %v208_v11 = vpop.eup %207  ;;  %vm314_vm10 = vmand %vm58_vm5, %vm64_vm6  ;;  %vm478_vm5 = vcmp.lt.f32.partialorder %v286_v5, 0 }
  0x1d   :  { %150 = vpush %v208_v11  ;;  %vm348_vm3 = vmxor %vm54_vm7, %vm122_vm13  ;;  %vm52_vm13 = vcmp.eq.f32.partialorder %v278_v0, 0  ;;  %vm121_vm7 = vcmp.lt.s32.totalorder %v286_v5, 0  ;;  %v88_v34 = vsel %vm314_vm10, %v87_v26, %v86_v22 }
  0x1e   :  { %vm356_vm4 = vmand %vm477_vm14, %vm302_vm2  ;;  %vm92_vm14 = vcmp.ne.f32.partialorder %v278_v0, %v278_v0 }
  0x1f   :  { %vm81_vm6 = vmor %vm323_vm12, %vm331_vm15  ;;  %vm83_vm15 = vcmp.eq.f32.partialorder %v284_v4, 3212836864 }
  0x20   :  { %v210_v14 = vpop.eup %209  ;;  %vm133_vm9 = vmor %vm342_vm1, %vm348_vm3  ;;  %v82_v31 = vsel %vm81_vm6, 2139095040, %v247_v27  ;;  %vm91_vm1 = vcmp.ne.f32.partialorder %v284_v4, %v284_v4  ;;  %vm68_vm3 = vcmp.eq.f32.partialorder %v284_v4, 1065353216  ;;  %vm71_vm6 = vcmp.eq.f32.partialorder %v290_v7, 2139095040 }
  0x21   :  { %v212_v15 = vpop.eup %211  ;;  %v48_v16 = vmul.f32 %v210_v14, %v278_v0  ;;  %vm380_vm12 = vmand %vm478_vm5, %vm302_vm2  ;;  %v134_v35 = vsel %vm133_vm9, 2139095040, %v247_v27  ;;  %vm135_vm2 = vcmp.eq.f32.partialorder %v286_v5, 3212836864  ;;  %v84_v39 = vsel %vm83_vm15, 1065353216, %v82_v31 }
  0x22   :  { %v100_v17 = vmul.f32 %v212_v15, %v278_v0  ;;  %vm76_vm5 = vmand %vm69_vm0, %vm314_vm10  ;;  %vm143_vm9 = vcmp.ne.f32.partialorder %v286_v5, %v286_v5  ;;  %v136_v44 = vsel %vm135_vm2, 1065353216, %v134_v35  ;;  %vm498_vm15 = vcmp.lt.f32.partialorder %v286_v5, 0 }
  0x23   :  { %213 = vpow2.f32 %v48_v16  ;;  %vm419_vm0 = vmor %vm91_vm1, %vm92_vm14  ;;  %v141_v46 = vsel %vm498_vm15, %v88_v34, %v86_v22  ;;  %vm499_vm1 = vcmp.eq.f32.partialorder %v281_v1, 2139095040 }
  0x24   :  { %215 = vpow2.f32 %v100_v17  ;;  %vm500_vm2 = vmmov %vm499_vm1 }
  0x2d   :  { %v214_v30 = vpop.eup %213 }
  0x2e   :  { %v216_v32 = vpop.eup %215  ;;  %v73_v33 = vsel %vm356_vm4, 2143289344, %v214_v30  ;;  %vm128_vm4 = vmand %vm121_vm7, %vm314_vm10 }
  0x2f   :  { %v75_v36 = vsel %vm67_vm8, %v74_v28, %v73_v33  ;;  %v125_v37 = vsel %vm380_vm12, 2143289344, %v216_v32  ;;  %vm495_vm8 = vcmp.lt.f32.partialorder %v284_v4, 0  ;;  %vm95_vm10 = vmor %vm68_vm3, %vm52_vm13  ;;  %vm123_vm12 = vcmp.eq.f32.partialorder %v294_v9, 2139095040 }
  0x30   :  { %v77_v38 = vxor.u32 2147483648, %v75_v36  ;;  %v127_v40 = vsel %vm119_vm11, %v74_v28, %v125_v37  ;;  %v89_v41 = vsel %vm495_vm8, %v88_v34, %v86_v22  ;;  %vm120_vm11 = vcmp.eq.f32.partialorder %v286_v5, 1065353216  ;;  %vm145_vm7 = vmor %vm143_vm9, %vm92_vm14 }
  0x31   :  { %v129_v43 = vxor.u32 2147483648, %v127_v40  ;;  %vm147_vm3 = vmor %vm120_vm11, %vm52_vm13 }
  0x32   :  { %v78_v45 = vsel %vm76_vm5, %v77_v38, %v75_v36  ;;  %vm53_vm5 = vcmp.eq.f32.partialorder %v278_v0, 1065353216 }
  0x33   :  { %v85_v47 = vsel %vm499_vm1, %v84_v39, %v78_v45  ;;  %v130_v48 = vsel %vm128_vm4, %v129_v43, %v127_v40 }
  0x34   :  { %v90_v49 = vsel %vm71_vm6, %v89_v41, %v85_v47  ;;  %v137_v50 = vsel %vm500_vm2, %v136_v44, %v130_v48 }
  0x35   :  { %v94_v51 = vsel %vm419_vm0, 2143289344, %v90_v49  ;;  %v142_v52 = vsel %vm123_vm12, %v141_v46, %v137_v50 }
  0x36   :  { %v96_v53 = vsel %vm95_vm10, 1065353216, %v94_v51  ;;  %v146_v54 = vsel %vm145_vm7, 2143289344, %v142_v52 }
  0x37   :  { %v97_v55 = vsel %vm53_vm5, %v284_v4, %v96_v53  ;;  %v148_v56 = vsel %vm147_vm3, 1065353216, %v146_v54 }
  0x38   :  { %v149_v57 = vsel %vm53_vm5, %v286_v5, %v148_v56 }
  0x39   :  { %v30_v58 = vadd.f32 %v149_v57, %v97_v55 }
  0x3b   :  { %31 = vadd.xlane.f32.xlu0 %v30_v58 }
  0x4e   :  { %s151_s0 = spop %150 }
  0x4f   :  { %v37_v59 = vstv %s151_s0 }
  0x50   :  { %v156_v62 = vand.u32 2147483647, %v37_v59  ;;  %v161_v1 = vtrunc.f32 %v37_v59  ;;  %vm160_vm8 = vcmp.lt.f32.partialorder %v37_v59, 0 }
  0x51   :  { %v192_v7 = vsel %vm160_vm8, 0, %v246_v21  ;;  %v180_v11 = vsel %vm160_vm8, 2139095040, %v247_v27 }
  0x52   :  { %v165_v0 = vtrunc.f32 %v156_v62  ;;  %vm157_vm14 = vcmp.eq.f32.partialorder %v156_v62, 2139095040  ;;  %vm162_vm13 = vcmp.ne.f32.partialorder %v37_v59, %v161_v1  ;;  %vm164_vm11 = vcmp.lt.f32.partialorder %v156_v62, 1266679808 }
  0x53   :  { %vm448_vm6 = vmor %vm162_vm13, %vm157_vm14  ;;  %v193_v9 = vxor.u32 2147483648, %v192_v7 }
  0x54   :  { %v166_v2 = vcvt.f32.s32 %v165_v0  ;;  %vm169_vm9 = vmneg %vm448_vm6 }
  0x56   :  { %v167_v6 = vand.u32 1, %v166_v2 }
  0x58   :  { %vm168_vm4 = vcmp.eq.s32.totalorder %v167_v6, 1 }
  0x59   :  { %vm170_vm10 = vmand %vm168_vm4, %vm169_vm9  ;;  %vm198_vm4 = vcmp.ne.f32.partialorder %v37_v59, %v37_v59 }
  0x5a   :  { %vm455_vm1 = vmand %vm164_vm11, %vm170_vm10  ;;  %vm158_vm10 = vcmp.eq.f32.partialorder %v37_v59, 0 }
  0x5b   :  { %v194_v15 = vsel %vm455_vm1, %v193_v9, %v192_v7 }
  0xc8   :  { %v32_v60 = vpop.xlane.xlu0 %31 }
  0xc9   :  { %v33_v61 = vmul.f32 0.00390625, %v32_v60 }
  0xcb   :  { %v152_v63 = vand.u32 2147483647, %v33_v61  ;;  %vm173_vm12 = vcmp.eq.f32.partialorder %v33_v61, 0  ;;  %vm172_vm7 = vcmp.lt.f32.partialorder %v33_v61, 0  ;;  %vm175_vm13 = vcmp.lt.s32.totalorder %v33_v61, 0 }
  0xcc   :  { %vm185_vm5 = vmand %vm160_vm8, %vm173_vm12  ;;  %vm197_vm11 = vcmp.ne.f32.partialorder %v33_v61, %v33_v61  ;;  %v195_v20 = vsel %vm172_vm7, %v194_v15, %v192_v7 }
  0xcd   :  { %217 = vlog2.f32 %v152_v63  ;;  %vm176_vm0 = vcmp.gt.f32.partialorder %v152_v63, 1065353216  ;;  %vm178_vm3 = vmand %vm172_vm7, %vm448_vm6  ;;  %vm177_vm6 = vcmp.eq.f32.partialorder %v152_v63, 2139095040 }
  0xce   :  { %vm186_vm15 = vmxor %vm160_vm8, %vm176_vm0  ;;  %vm189_vm0 = vcmp.eq.f32.partialorder %v33_v61, 3212836864 }
  0xcf   :  { %vm187_vm2 = vmor %vm185_vm5, %vm186_vm15  ;;  %vm174_vm15 = vcmp.eq.f32.partialorder %v33_v61, 1065353216  ;;  %vm39_vm5 = vcmask 7168  }
  0xd0   :  { %v188_v14 = vsel %vm187_vm2, 2139095040, %v247_v27  ;;  %vm182_vm9 = vmand %vm175_vm13, %vm455_vm1  ;;  %vm159_vm2 = vcmp.eq.f32.partialorder %v37_v59, 1065353216 }
  0xd1   :  { %v190_v18 = vsel %vm189_vm0, 1065353216, %v188_v14  ;;  %vm199_vm8 = vmor %vm197_vm11, %vm198_vm4 }
  0xd7   :  { %v218_v3 = vpop.eup %217 }
  0xd8   :  { %v154_v5 = vmul.f32 %v218_v3, %v37_v59 }
  0xda   :  { %219 = vpow2.f32 %v154_v5 }
  0xe4   :  { %v220_v10 = vpop.eup %219 }
  0xe5   :  { %v179_v12 = vsel %vm178_vm3, 2143289344, %v220_v10 }
  0xe6   :  { %v181_v13 = vsel %vm173_vm12, %v180_v11, %v179_v12  ;;  %vm201_vm12 = vmor %vm174_vm15, %vm158_vm10 }
  0xe7   :  { %v183_v16 = vxor.u32 2147483648, %v181_v13 }
  0xe9   :  { %v184_v17 = vsel %vm182_vm9, %v183_v16, %v181_v13 }
  0xea   :  { %v191_v19 = vsel %vm157_vm14, %v190_v18, %v184_v17 }
  0xeb   :  { %v196_v21 = vsel %vm177_vm6, %v195_v20, %v191_v19 }
  0xec   :  { %v200_v22 = vsel %vm199_vm8, 2143289344, %v196_v21 }
  0xed   :  { %v202_v23 = vsel %vm201_vm12, 1065353216, %v200_v22 }
  0xee   :  { %v203_v24 = vsel %vm159_vm2, %v33_v61, %v202_v23 }
  0xef   :  { %40 = vst.msk [vmem:[%s475_s2] sm:$0xff] %vm39_vm5, %v203_v24 }
  0xf0   :  { %45 = vsyncpa [#allocation6], 1 }

</bundles_post_ra>
